<compile_context>
chip_gen: v5e
topology: v5e:2x2
jax: 0.10.0
libtpu: 0.0.40
codegen_flags: <defaults>
</compile_context>

<pallas_src>
import jax
import jax.numpy as jnp
from jax.experimental import pallas as pl
from jax.experimental.pallas import tpu as pltpu


def decoder_kernel(hidden_ref, enc_ref, encf_ref,
                   wah_ref, wae_ref, ba_ref, v_ref,
                   wg_ref, bg_ref,
                   woh_ref, wow_ref, bo_ref,
                   final_ref, hnew_ref):
    h = hidden_ref[...]                         # [B, H]
    enc = enc_ref[...]                          # [B, L, E2]
    B, L, E2 = enc.shape
    H = h.shape[1]

    # ---- additive attention -------------------------------------------------
    # hidden projection with bias folded once on [B, H]
    hb = jnp.dot(h, wah_ref[...], preferred_element_type=jnp.float32) + ba_ref[...]
    # encoder projection: clean 2-D matmul on the wrapper-flattened copy.
    ec = jnp.dot(encf_ref[...], wae_ref[...], preferred_element_type=jnp.float32)
    # reshape back is layout-preserving: L == 8 (a full sublane tile) per batch.
    ec = ec.reshape(B, L, H)
    energy = jnp.tanh(hb[:, None, :] + ec)                  # [B, L, H]
    scores = jnp.sum(energy * v_ref[...], axis=-1)          # [B, L] (lane reduce)
    scores = scores - jnp.max(scores, axis=-1, keepdims=True)
    es = jnp.exp(scores)
    a = es / jnp.sum(es, axis=-1, keepdims=True)            # [B, L]

    # ---- weighted context: bmm(a.unsqueeze(1), encoder_outputs).squeeze(1) --
    weighted = jnp.sum(a[:, :, None] * enc, axis=1)         # [B, E2]

    # ---- single-step GRU: ONE fused MXU matmul -------------------------------
    # wg columns are [ r | z | n_x | n_h ]  (each H wide, 4H = 128 lanes total);
    # bg already contains (bih_r+bhh_r | bih_z+bhh_z | bih_n | bhh_n).
    x = jnp.concatenate([weighted, h], axis=-1)             # [B, E2+H]
    g = jnp.dot(x, wg_ref[...], preferred_element_type=jnp.float32) + bg_ref[...]
    r = jax.nn.sigmoid(g[:, 0:H])
    z = jax.nn.sigmoid(g[:, H:2 * H])
    n = jnp.tanh(g[:, 2 * H:3 * H] + r * g[:, 3 * H:4 * H])  # == tanh(i_n + r*h_n)
    h_new = (1.0 - z) * n + z * h                             # [B, H]

    # ---- self.out(cat([output, weighted])): N=1 Linear as VPU mul + lane reduce
    final = (jnp.sum(h_new * woh_ref[...], axis=-1, keepdims=True)
             + jnp.sum(weighted * wow_ref[...], axis=-1, keepdims=True)
             + bo_ref[...])                                   # [B, 1]

    final_ref[...] = final.astype(final_ref.dtype)
    hnew_ref[...] = h_new.astype(hnew_ref.dtype)


def _fuse_gru_params(p, E2, H):
    """Build the block GRU weight (E2+H, 4H) and bias (1, 4H) offline (free)."""
    wih, whh = p["wih"], p["whh"]            # (E2, 3H), (H, 3H)  columns [r|z|n]
    bih, bhh = p["bih"], p["bhh"]            # (1, 3H)
    z_h = jnp.zeros((H, H), jnp.float32)
    z_e = jnp.zeros((E2, H), jnp.float32)
    w_r = jnp.concatenate([wih[:, 0:H],        whh[:, 0:H]],        axis=0)
    w_z = jnp.concatenate([wih[:, H:2 * H],    whh[:, H:2 * H]],    axis=0)
    w_nx = jnp.concatenate([wih[:, 2 * H:3 * H], z_h],              axis=0)
    w_nh = jnp.concatenate([z_e,               whh[:, 2 * H:3 * H]], axis=0)
    wg = jnp.concatenate([w_r, w_z, w_nx, w_nh], axis=1)            # (E2+H, 4H)
    bg = jnp.concatenate([bih[:, 0:H] + bhh[:, 0:H],
                          bih[:, H:2 * H] + bhh[:, H:2 * H],
                          bih[:, 2 * H:3 * H],
                          bhh[:, 2 * H:3 * H]], axis=1)             # (1, 4H)
    return wg, bg


def decoder_forward(hidden, encoder_outputs, p):
    B, H = hidden.shape
    _, L, E2 = encoder_outputs.shape

    # Wrapper-side (XLA) prep: flattened encoder view + fused/transposed weights.
    enc_flat = encoder_outputs.reshape(B * L, E2)
    wg, bg = _fuse_gru_params(p, E2, H)
    woh_row = p["woh"].T                      # (1, H)
    wow_row = p["wow"].T                      # (1, E2)

    operands = (hidden, encoder_outputs, enc_flat,
                p["wah"], p["wae"], p["ba"], p["v"],
                wg, bg, woh_row, wow_row, p["bo"])

    flops = 2 * (B * H * H            # hidden projection
                 + B * L * E2 * H     # encoder projection
                 + B * (E2 + H) * 4 * H  # fused GRU matmul
                 + B * L * E2         # weighted context
                 + B * (H + E2))      # output reduces
    transcendentals = B * L * H + B * L + 3 * B * H
    bytes_accessed = sum(int(x.size) * 4 for x in operands) + (B * 1 + B * H) * 4

    vmem_spec = pl.BlockSpec(memory_space=pltpu.MemorySpace.VMEM)
    return pl.pallas_call(
        decoder_kernel,
        out_shape=(jax.ShapeDtypeStruct((B, 1), jnp.float32),
                   jax.ShapeDtypeStruct((B, H), jnp.float32)),
        in_specs=[vmem_spec] * len(operands),
        out_specs=(vmem_spec, vmem_spec),
        cost_estimate=pl.CostEstimate(flops=flops,
                                      transcendentals=transcendentals,
                                      bytes_accessed=bytes_accessed),
    )(*operands)
    # TODO(synk): for serving-scale batches on v7x, add a parallel B grid axis so
    # both TensorCores are used; at B=2 a grid is pure overhead.


def decoder_reference(hidden, enc, p):
    """Pure-JAX reference mirroring the PyTorch forward pass (original params)."""
    B, L, E2 = enc.shape
    H = hidden.shape[1]
    hc = hidden @ p["wah"]
    ec = (enc.reshape(B * L, E2) @ p["wae"]).reshape(B, L, H)
    energy = jnp.tanh(hc[:, None, :] + ec + p["ba"][None, :, :])
    scores = jnp.sum(energy * p["v"][None, :, :], axis=-1)
    a = jax.nn.softmax(scores, axis=-1)
    weighted = jnp.einsum('bl,ble->be', a, enc)
    gi = weighted @ p["wih"] + p["bih"]
    gh = hidden @ p["whh"] + p["bhh"]
    r = jax.nn.sigmoid(gi[:, :H] + gh[:, :H])
    z = jax.nn.sigmoid(gi[:, H:2 * H] + gh[:, H:2 * H])
    n = jnp.tanh(gi[:, 2 * H:] + r * gh[:, 2 * H:])
    h_new = (1.0 - z) * n + z * hidden
    final = h_new @ p["woh"] + weighted @ p["wow"] + p["bo"]
    return final, h_new


if __name__ == "__main__":
    # Small shapes implied by the module: enc_hid=16 (bi-dir -> 32), dec_hid=32,
    # batch=2, src_len=8.  embedding_dim / dropout are unused in forward().
    B, L = 2, 8
    enc_hid, dec_hid = 16, 32
    E2, H = 2 * enc_hid, dec_hid

    key = jax.random.PRNGKey(0)
    keys = jax.random.split(key, 13)
    s = 0.1
    params = {
        # attention: Linear(E2 + H -> H) split into [hidden | enc] column blocks
        "wah": jax.random.normal(keys[0], (H, H), jnp.float32) * s,
        "wae": jax.random.normal(keys[1], (E2, H), jnp.float32) * s,
        "ba":  jax.random.normal(keys[2], (1, H), jnp.float32) * s,
        "v":   jax.random.normal(keys[3], (1, H), jnp.float32) * s,   # Linear(H->1, bias=False)
        # GRU(E2 -> H), gates concatenated as [r | z | n] (PyTorch order)
        "wih": jax.random.normal(keys[4], (E2, 3 * H), jnp.float32) * s,
        "whh": jax.random.normal(keys[5], (H, 3 * H), jnp.float32) * s,
        "bih": jax.random.normal(keys[6], (1, 3 * H), jnp.float32) * s,
        "bhh": jax.random.normal(keys[7], (1, 3 * H), jnp.float32) * s,
        # out: Linear(E2 + H -> 1) split into [output | weighted] column blocks
        "woh": jax.random.normal(keys[8], (H, 1), jnp.float32) * s,
        "wow": jax.random.normal(keys[9], (E2, 1), jnp.float32) * s,
        "bo":  jax.random.normal(keys[10], (1, 1), jnp.float32) * s,
    }
    hidden = jax.random.normal(keys[11], (B, H), jnp.float32)
    encoder_outputs = jax.random.normal(keys[12], (B, L, E2), jnp.float32)

    final, h_new = decoder_forward(hidden, encoder_outputs, params)
    jax.block_until_ready((final, h_new))

    ref_final, ref_h = decoder_reference(hidden, encoder_outputs, params)
    assert final.shape == (B, 1) and h_new.shape == (B, H)
    assert jnp.allclose(final, ref_final, atol=1e-4, rtol=1e-4)
    assert jnp.allclose(h_new, ref_h, atol=1e-4, rtol=1e-4)
    print("KERNEL_OK")
</pallas_src>

<mosaic_0001>
module attributes {stable_mosaic.version = 11 : i64} {
  func.func @decoder_kernel(%arg0: memref<2x32xf32, #tpu.memory_space<vmem>>, %arg1: memref<2x8x32xf32, #tpu.memory_space<vmem>>, %arg2: memref<16x32xf32, #tpu.memory_space<vmem>>, %arg3: memref<32x32xf32, #tpu.memory_space<vmem>>, %arg4: memref<32x32xf32, #tpu.memory_space<vmem>>, %arg5: memref<1x32xf32, #tpu.memory_space<vmem>>, %arg6: memref<1x32xf32, #tpu.memory_space<vmem>>, %arg7: memref<64x128xf32, #tpu.memory_space<vmem>>, %arg8: memref<1x128xf32, #tpu.memory_space<vmem>>, %arg9: memref<1x32xf32, #tpu.memory_space<vmem>>, %arg10: memref<1x32xf32, #tpu.memory_space<vmem>>, %arg11: memref<1x1xf32, #tpu.memory_space<vmem>>, %arg12: memref<2x1xf32, #tpu.memory_space<vmem>>, %arg13: memref<2x32xf32, #tpu.memory_space<vmem>>) attributes {dimension_semantics = [], scalar_prefetch = 0 : i64, scratch_operands = 0 : i64, tpu.core_type = #tpu.core_type<tc>} {
    %c0 = arith.constant 0 : index
    %c0_0 = arith.constant 0 : index
    %0 = vector.load %arg0[%c0, %c0_0] : memref<2x32xf32, #tpu.memory_space<vmem>>, vector<2x32xf32>
    %c0_1 = arith.constant 0 : index
    %c0_2 = arith.constant 0 : index
    %c0_3 = arith.constant 0 : index
    %1 = vector.load %arg1[%c0_1, %c0_2, %c0_3] : memref<2x8x32xf32, #tpu.memory_space<vmem>>, vector<2x8x32xf32>
    %c0_4 = arith.constant 0 : index
    %c0_5 = arith.constant 0 : index
    %2 = vector.load %arg3[%c0_4, %c0_5] : memref<32x32xf32, #tpu.memory_space<vmem>>, vector<32x32xf32>
    %cst = arith.constant dense<0.000000e+00> : vector<2x32xf32>
    %3 = tpu.matmul %0, %2, %cst {dimension_numbers = #tpu.dot_dimension_numbers<[1], [0], [0], [1], [0, 0, 1, 1], [], []>} : vector<2x32xf32>, vector<32x32xf32>, vector<2x32xf32> -> vector<2x32xf32>
    %c0_6 = arith.constant 0 : index
    %c0_7 = arith.constant 0 : index
    %4 = vector.load %arg5[%c0_6, %c0_7] : memref<1x32xf32, #tpu.memory_space<vmem>>, vector<1x32xf32>
    %5 = vector.broadcast %4 : vector<1x32xf32> to vector<2x32xf32>
    %6 = arith.addf %3, %5 : vector<2x32xf32>
    %c0_8 = arith.constant 0 : index
    %c0_9 = arith.constant 0 : index
    %7 = vector.load %arg2[%c0_8, %c0_9] : memref<16x32xf32, #tpu.memory_space<vmem>>, vector<16x32xf32>
    %c0_10 = arith.constant 0 : index
    %c0_11 = arith.constant 0 : index
    %8 = vector.load %arg4[%c0_10, %c0_11] : memref<32x32xf32, #tpu.memory_space<vmem>>, vector<32x32xf32>
    %cst_12 = arith.constant dense<0.000000e+00> : vector<16x32xf32>
    %9 = tpu.matmul %7, %8, %cst_12 {dimension_numbers = #tpu.dot_dimension_numbers<[1], [0], [0], [1], [0, 0, 1, 1], [], []>} : vector<16x32xf32>, vector<32x32xf32>, vector<16x32xf32> -> vector<16x32xf32>
    %10 = vector.shape_cast %9 : vector<16x32xf32> to vector<2x8x32xf32>
    %11 = vector.shape_cast %6 : vector<2x32xf32> to vector<2x1x32xf32>
    %12 = vector.broadcast %11 : vector<2x1x32xf32> to vector<2x8x32xf32>
    %13 = arith.addf %12, %10 : vector<2x8x32xf32>
    %14 = math.tanh %13 : vector<2x8x32xf32>
    %c0_13 = arith.constant 0 : index
    %c0_14 = arith.constant 0 : index
    %15 = vector.load %arg6[%c0_13, %c0_14] : memref<1x32xf32, #tpu.memory_space<vmem>>, vector<1x32xf32>
    %16 = vector.shape_cast %15 : vector<1x32xf32> to vector<1x1x32xf32>
    %17 = vector.broadcast %16 : vector<1x1x32xf32> to vector<2x8x32xf32>
    %18 = arith.mulf %14, %17 : vector<2x8x32xf32>
    %cst_15 = arith.constant dense<0.000000e+00> : vector<2x8xf32>
    %19 = vector.multi_reduction <add>, %18, %cst_15 [2] : vector<2x8x32xf32> to vector<2x8xf32>
    %cst_16 = arith.constant dense<0xFF800000> : vector<2xf32>
    %20 = vector.multi_reduction <maximumf>, %19, %cst_16 [1] : vector<2x8xf32> to vector<2xf32>
    %21 = vector.shape_cast %20 : vector<2xf32> to vector<2x1xf32>
    %22 = vector.broadcast %21 : vector<2x1xf32> to vector<2x8xf32>
    %23 = arith.subf %19, %22 : vector<2x8xf32>
    %24 = math.exp %23 : vector<2x8xf32>
    %cst_17 = arith.constant dense<0.000000e+00> : vector<2xf32>
    %25 = vector.multi_reduction <add>, %24, %cst_17 [1] : vector<2x8xf32> to vector<2xf32>
    %26 = vector.shape_cast %25 : vector<2xf32> to vector<2x1xf32>
    %27 = vector.broadcast %26 : vector<2x1xf32> to vector<2x8xf32>
    %28 = arith.divf %24, %27 : vector<2x8xf32>
    %29 = vector.shape_cast %28 : vector<2x8xf32> to vector<2x8x1xf32>
    %30 = vector.broadcast %29 : vector<2x8x1xf32> to vector<2x8x32xf32>
    %31 = arith.mulf %30, %1 : vector<2x8x32xf32>
    %cst_18 = arith.constant dense<0.000000e+00> : vector<2x32xf32>
    %32 = vector.multi_reduction <add>, %31, %cst_18 [1] : vector<2x8x32xf32> to vector<2x32xf32>
    %33 = tpu.concatenate %32, %0 in 1 : vector<2x32xf32>, vector<2x32xf32> -> vector<2x64xf32>
    %c0_19 = arith.constant 0 : index
    %c0_20 = arith.constant 0 : index
    %34 = vector.load %arg7[%c0_19, %c0_20] : memref<64x128xf32, #tpu.memory_space<vmem>>, vector<64x128xf32>
    %cst_21 = arith.constant dense<0.000000e+00> : vector<2x128xf32>
    %35 = tpu.matmul %33, %34, %cst_21 {dimension_numbers = #tpu.dot_dimension_numbers<[1], [0], [0], [1], [0, 0, 1, 1], [], []>} : vector<2x64xf32>, vector<64x128xf32>, vector<2x128xf32> -> vector<2x128xf32>
    %c0_22 = arith.constant 0 : index
    %c0_23 = arith.constant 0 : index
    %36 = vector.load %arg8[%c0_22, %c0_23] : memref<1x128xf32, #tpu.memory_space<vmem>>, vector<1x128xf32>
    %37 = vector.broadcast %36 : vector<1x128xf32> to vector<2x128xf32>
    %38 = arith.addf %35, %37 : vector<2x128xf32>
    %39 = vector.extract_strided_slice %38 {offsets = [0, 0], sizes = [2, 32], strides = [1, 1]} : vector<2x128xf32> to vector<2x32xf32>
    %40 = arith.negf %39 : vector<2x32xf32>
    %41 = math.exp %40 : vector<2x32xf32>
    %cst_24 = arith.constant 1.000000e+00 : f32
    %42 = vector.broadcast %cst_24 : f32 to vector<2x32xf32>
    %43 = arith.addf %42, %41 : vector<2x32xf32>
    %44 = arith.divf %42, %43 : vector<2x32xf32>
    %45 = vector.extract_strided_slice %38 {offsets = [0, 32], sizes = [2, 32], strides = [1, 1]} : vector<2x128xf32> to vector<2x32xf32>
    %46 = arith.negf %45 : vector<2x32xf32>
    %47 = math.exp %46 : vector<2x32xf32>
    %cst_25 = arith.constant 1.000000e+00 : f32
    %48 = vector.broadcast %cst_25 : f32 to vector<2x32xf32>
    %49 = arith.addf %48, %47 : vector<2x32xf32>
    %50 = arith.divf %48, %49 : vector<2x32xf32>
    %51 = vector.extract_strided_slice %38 {offsets = [0, 64], sizes = [2, 32], strides = [1, 1]} : vector<2x128xf32> to vector<2x32xf32>
    %52 = vector.extract_strided_slice %38 {offsets = [0, 96], sizes = [2, 32], strides = [1, 1]} : vector<2x128xf32> to vector<2x32xf32>
    %53 = arith.mulf %44, %52 : vector<2x32xf32>
    %54 = arith.addf %51, %53 : vector<2x32xf32>
    %55 = math.tanh %54 : vector<2x32xf32>
    %cst_26 = arith.constant 1.000000e+00 : f32
    %56 = vector.broadcast %cst_26 : f32 to vector<2x32xf32>
    %57 = arith.subf %56, %50 : vector<2x32xf32>
    %58 = arith.mulf %57, %55 : vector<2x32xf32>
    %59 = arith.mulf %50, %0 : vector<2x32xf32>
    %60 = arith.addf %58, %59 : vector<2x32xf32>
    %c0_27 = arith.constant 0 : index
    %c0_28 = arith.constant 0 : index
    %61 = vector.load %arg9[%c0_27, %c0_28] : memref<1x32xf32, #tpu.memory_space<vmem>>, vector<1x32xf32>
    %62 = vector.broadcast %61 : vector<1x32xf32> to vector<2x32xf32>
    %63 = arith.mulf %60, %62 : vector<2x32xf32>
    %cst_29 = arith.constant dense<0.000000e+00> : vector<2xf32>
    %64 = vector.multi_reduction <add>, %63, %cst_29 [1] : vector<2x32xf32> to vector<2xf32>
    %65 = vector.shape_cast %64 : vector<2xf32> to vector<2x1xf32>
    %c0_30 = arith.constant 0 : index
    %c0_31 = arith.constant 0 : index
    %66 = vector.load %arg10[%c0_30, %c0_31] : memref<1x32xf32, #tpu.memory_space<vmem>>, vector<1x32xf32>
    %67 = vector.broadcast %66 : vector<1x32xf32> to vector<2x32xf32>
    %68 = arith.mulf %32, %67 : vector<2x32xf32>
    %cst_32 = arith.constant dense<0.000000e+00> : vector<2xf32>
    %69 = vector.multi_reduction <add>, %68, %cst_32 [1] : vector<2x32xf32> to vector<2xf32>
    %70 = vector.shape_cast %69 : vector<2xf32> to vector<2x1xf32>
    %71 = arith.addf %65, %70 : vector<2x1xf32>
    %c0_33 = arith.constant 0 : index
    %c0_34 = arith.constant 0 : index
    %72 = vector.load %arg11[%c0_33, %c0_34] : memref<1x1xf32, #tpu.memory_space<vmem>>, vector<1x1xf32>
    %73 = vector.broadcast %72 : vector<1x1xf32> to vector<2x1xf32>
    %74 = arith.addf %71, %73 : vector<2x1xf32>
    %c0_35 = arith.constant 0 : index
    %c0_36 = arith.constant 0 : index
    %75 = vector.load %arg12[%c0_35, %c0_36] : memref<2x1xf32, #tpu.memory_space<vmem>>, vector<2x1xf32>
    tpu.vector_store %arg12[%c0_35, %c0_36], %74 {strides = array<i32>} : memref<2x1xf32, #tpu.memory_space<vmem>>, vector<2x1xf32>,
    %c0_37 = arith.constant 0 : index
    %c0_38 = arith.constant 0 : index
    %76 = vector.load %arg13[%c0_37, %c0_38] : memref<2x32xf32, #tpu.memory_space<vmem>>, vector<2x32xf32>
    tpu.vector_store %arg13[%c0_37, %c0_38], %60 {strides = array<i32>} : memref<2x32xf32, #tpu.memory_space<vmem>>, vector<2x32xf32>,
    return
  }
}

</mosaic_0001>

<bundles_post_ra>
// kernel: tpu_custom_call.1
= control target key start
LH: loop header
LB: loop body
LE: loop exit
PB: predicated region body
PF: predicated region fallthrough
CT: control target
= control target key end

     0   :  { %s808_s0 = inlined_call_operand.vmem [shape: f32[2,32], index: 0, kind: input, shape index: {}]   ;;  %s809_s1 = inlined_call_operand.hbm [shape: f32[2,8,32], index: 1, kind: input, shape index: {}]   ;;  %s810_s2 = inlined_call_operand.hbm [shape: f32[16,32], index: 2, kind: input, shape index: {}]   ;;  %s811_s3 = inlined_call_operand.hbm [shape: f32[32,32], index: 3, kind: input, shape index: {}]   ;;  %s812_s4 = inlined_call_operand.hbm [shape: f32[32,32], index: 4, kind: input, shape index: {}]   ;;  %s813_s5 = inlined_call_operand.vmem [shape: f32[1,32], index: 5, kind: input, shape index: {}]   ;;  %s814_s6 = inlined_call_operand.vmem [shape: f32[1,32], index: 6, kind: input, shape index: {}]   ;;  %s815_s7 = inlined_call_operand.hbm [shape: f32[64,128], index: 7, kind: input, shape index: {}]   ;;  %s816_s8 = inlined_call_operand.vmem [shape: f32[1,128], index: 8, kind: input, shape index: {}]   ;;  %s817_s9 = inlined_call_operand.vmem [shape: f32[1,32], index: 9, kind: input, shape index: {}]   ;;  %s818_s10 = inlined_call_operand.vmem [shape: f32[1,32], index: 10, kind: input, shape index: {}]   ;;  %s819_s11 = inlined_call_operand.<no memory space> [shape: f32[1,1], index: 11, kind: input, shape index: {}]   ;;  %s820_s12 = inlined_call_operand.vmem [shape: f32[2,1], index: 12, kind: output, shape index: {0}]   ;;  %s821_s13 = inlined_call_operand.hbm [shape: f32[2,32], index: 13, kind: output, shape index: {1}]  }
   0x1   :  { %v19_v0 = vstv %s819_s11 }
   0x2   :  { %20 = vst [vmem:[#allocation2] sm:$0x1] %v19_v0 }
   0x3   :  { %21 = vsyncpa [#allocation4], 0 }
   0x4   :  { %22 = vsyncpa [#allocation7], 0 }
   0x5   :  { %23 = vsyncpa [#allocation10], 0 }
   0x6   :  { %24 = vsyncpa [#allocation5], 0  ;;  %s44_s29 = sshll.u32 %s810_s2, 4  ;;  %s663_s30 = smov [#allocation6]   ;;  %s45_s29 = int_to_ptr.hbm [resolvable:$true] %s44_s29 }
   0x7   :  { %s46_s14 = sshll.u32 %s663_s30, 4  ;;  %s70_s17 = sshll.u32 %s812_s4, 4  ;;  %s47_s14 = int_to_ptr.vmem [resolvable:$true] %s46_s14  ;;  %s71_s17 = int_to_ptr.hbm [resolvable:$true] %s70_s17 }
   0x8   :  { %s664_s18 = smov 128   ;;  %s665_s19 = smov 8  }
   0x9   :  { %52 = dma.hbm_to_vmem [thread:$0]  %s45_s29, 256, %s47_s14, [#allocation7], %s664_s18, %s664_s18, %s665_s19  }
   0xa   :  { %s666_s11 = smov [#allocation9]   ;;  %s31_s23 = sshll.u32 %s809_s1, 4  ;;  %s32_s23 = int_to_ptr.hbm [resolvable:$true] %s31_s23 }
   0xb   :  { %s72_s20 = sshll.u32 %s666_s11, 4  ;;  %s57_s25 = sshll.u32 %s811_s3, 4  ;;  %s73_s20 = int_to_ptr.vmem [resolvable:$true] %s72_s20  ;;  %s58_s25 = int_to_ptr.hbm [resolvable:$true] %s57_s25 }
   0xc   :  { %78 = dma.hbm_to_vmem [thread:$0]  %s71_s17, 512, %s73_s20, [#allocation10], %s664_s18, %s664_s18, %s665_s19  }
   0xd   :  { %s667_s26 = smov [#allocation3]   ;;  %s668_s4 = smov [#allocation8]  }
   0xe   :  { %s33_s27 = sshll.u32 %s667_s26, 4  ;;  %s59_s28 = sshll.u32 %s668_s4, 4  ;;  %s34_s27 = int_to_ptr.vmem [resolvable:$true] %s33_s27  ;;  %s60_s28 = int_to_ptr.vmem [resolvable:$true] %s59_s28 }
   0xf   :  { %39 = dma.hbm_to_vmem [thread:$0]  %s32_s23, 256, %s34_s27, [#allocation4], %s664_s18, %s664_s18, %s665_s19  }
  0x10   :  { %s87_s14 = sshll.u32 %s815_s7, 4  ;;  %s669_s1 = smov [#allocation11]   ;;  %s88_s14 = int_to_ptr.hbm [resolvable:$true] %s87_s14 }
  0x11   :  { %65 = dma.hbm_to_vmem [thread:$0]  %s58_s25, 512, %s60_s28, [#allocation7], %s664_s18, %s664_s18, %s665_s19  }
  0x12   :  { %s89_s15 = sshll.u32 %s669_s1, 4  ;;  %s90_s15 = int_to_ptr.vmem [resolvable:$true] %s89_s15 }
  0x13   :  { %95 = dma.hbm_to_vmem [thread:$0]  %s88_s14, 1024, %s90_s15, [#allocation10], %s664_s18, %s664_s18, %s665_s19  }
  0x14   :  { %655 = dma.done.wait [#allocation4], 256  }
  0x15   :  { %656 = vsyncadd [#allocation4], 4294967040 }
  0x16   :  { %657 = dma.done.wait [#allocation7], 768  }
  0x17   :  { %658 = vsyncadd [#allocation7], 4294966528 }
  0x18   :  { %659 = dma.done.wait [#allocation10], 1536  }
  0x19   :  { %660 = vsyncadd [#allocation10], 4294965760  ;;  %v130_v1 = vld [vmem:[#allocation8 + $0x18] sm:$0xff]  ;;  %v129_v3 = vld [vmem:[#allocation8 + $0x10] sm:$0xff]  ;;  %vm135_vm0 = vcmask 261120   ;;  %v218_v30 = vlaneseq  ;;  %vm222_vm1 = vcmask 1041409  }
  0x1a   :  { %v164_v2 = vld [vmem:[#allocation9 + $0x18] sm:$0xff]  ;;  %151 = vmatpush.msra.mxu0 %v130_v1  ;;  %v163_v4 = vld [vmem:[#allocation9 + $0x10] sm:$0xff]  ;;  %v128_v5 = vld [vmem:[#allocation8 + $0x8] sm:$0xff]  ;;  %vm225_vm2 = vcmask 58368   ;;  %v670_v37 = vmov 0   ;;  %vm336_vm11 = vcmask 523264  }
  0x1b   :  { %468 = vmatpush.msra.mxu3 %v164_v2  ;;  %183 = vmatpush.msra.mxu1 %v164_v2  ;;  %v162_v6 = vld [vmem:[#allocation9 + $0x8] sm:$0xff]  ;;  %v127_v7 = vld [vmem:[#allocation8] sm:$0xff]  ;;  %v160_v10 = vld [vmem:[#allocation6 + $0x8] sm:$0xff]  ;;  %v219_v31 = vand.u32 127, %v218_v30  ;;  %s673_s22 = smov 96   ;;  %s449_s25 = sshll.u32 %s821_s13, 4  ;;  %s450_s25 = int_to_ptr.hbm [resolvable:$true] %s449_s25 }
  0x1c   :  { %152 = vmatpush.msra.mxu0 %v129_v3  ;;  %v161_v8 = vld [vmem:[#allocation9] sm:$0xff]  ;;  %v159_v11 = vld [vmem:[#allocation6] sm:$0xff]  ;;  %v487_v12 = vld [vmem:[%s813_s5] ss:$0 sm:$0xff]  ;;  %485 = vset.pattern.permute.xlu2 %v670_v37  ;;  %s671_s5 = smov 32  }
  0x1d   :  { %469 = vmatpush.msra.mxu3 %v163_v4  ;;  %v766_v9 = vld [vmem:[%s808_s0] sm:$0x3]  ;;  %184 = vmatpush.msra.mxu1 %v163_v4 }
  0x1e   :  { %153 = vmatpush.msra.mxu0 %v128_v5  ;;  %v488_v22 = vld [vmem:[%s814_s6] ss:$0 sm:$0xff]  ;;  %484 = vset.pattern.permute.xlu1 %v670_v37 }
  0x1f   :  { %470 = vmatpush.msra.mxu3 %v162_v6  ;;  %185 = vmatpush.msra.mxu1 %v162_v6 }
  0x20   :  { %154 = vmatpush.msra.mxu0 %v127_v7  ;;  %486 = vset.pattern.permute.xlu0 %v670_v37 }
  0x21   :  { %471 = vmatpush.msra.mxu3 %v161_v8  ;;  %463 = vmatmul.msk.f32.vlgmr.msra.gmra.mxu0 %vm135_vm0, %v766_v9 }
  0x22   :  { %465 = vmatmul.msk.f32.vlgmr.msra.gmra.mxu3 %vm135_vm0, %v160_v10  ;;  %186 = vmatpush.msra.mxu1 %v161_v8 }
  0x23   :  { %464 = vmatmul.msk.f32.vlgmr.msra.gmra.mxu1 %vm135_vm0, %v159_v11 }
  0x9e   :  { %v156_v13 = vpop.f32.mrf.mxu0 }
  0x9f   :  { %v157_v14 = vadd.f32 %v487_v12, %v156_v13 }
  0xa0   :  { %v188_v15 = vpop.f32.mrf.mxu1 }
  0xa1   :  { %v195_v16 = vrot.slane %v157_v14, 1  ;;  %v196_v17 = vperm.slane %v157_v14, 0 }
  0xa3   :  { %v200_v18 = vadd.f32 %v196_v17, %v188_v15  ;;  %v197_v19 = vperm.slane %v195_v16, 0  ;;  %v331_v15 = vld [vmem:[#allocation11 + $0x38] sm:$0xff]  ;;  %v330_v16 = vld [vmem:[#allocation11 + $0x30] sm:$0xff]  ;;  %v329_v17 = vld [vmem:[#allocation11 + $0x28] sm:$0xff] }
  0xa4   :  { %348 = vmatpush.msra.mxu2 %v331_v15 }
  0xa5   :  { %v191_v20 = vpop.f32.mrf.mxu3  ;;  %493 = vtanh.f32 %v200_v18  ;;  %v328_v18 = vld [vmem:[#allocation11 + $0x20] sm:$0xff] }
  0xa6   :  { %v201_v21 = vadd.f32 %v197_v19, %v191_v20  ;;  %349 = vmatpush.msra.mxu2 %v330_v16  ;;  %v327_v19 = vld [vmem:[#allocation11 + $0x18] sm:$0xff]  ;;  %v326_v20 = vld [vmem:[#allocation11 + $0x10] sm:$0xff] }
  0xa8   :  { %495 = vtanh.f32 %v201_v21  ;;  %350 = vmatpush.msra.mxu2 %v329_v17  ;;  %v325_v21 = vld [vmem:[#allocation11 + $0x8] sm:$0xff] }
  0xaa   :  { %351 = vmatpush.msra.mxu2 %v328_v18 }
  0xab   :  { %v494_v23 = vpop.eup %493 }
  0xac   :  { %v208_v24 = vmul.f32 %v494_v23, %v488_v22  ;;  %352 = vmatpush.msra.mxu2 %v327_v19  ;;  %v125_v23 = vld [vmem:[#allocation3] sm:$0xff] }
  0xae   :  { %v210_v25 = vsel %vm135_vm0, %v208_v24, 0.0  ;;  %v496_v26 = vpop.eup %495  ;;  %353 = vmatpush.msra.mxu2 %v326_v20  ;;  %v126_v24 = vld [vmem:[#allocation3 + $0x8] sm:$0xff]  ;;  %v492_v20 = vld [vmem:[#allocation2] ss:$0 sm:$0xff] }
  0xaf   :  { %211 = vadd.xlane.f32.xlu0 %v210_v25  ;;  %v209_v27 = vmul.f32 %v496_v26, %v488_v22  ;;  %v324_v22 = vld [vmem:[#allocation11] sm:$0xff] }
  0xb0   :  { %354 = vmatpush.msra.mxu2 %v325_v21 }
  0xb1   :  { %v213_v28 = vsel %vm135_vm0, %v209_v27, 0.0 }
  0xb2   :  { %355 = vmatpush.msra.mxu2 %v324_v22 }
  0xb7   :  { %214 = vadd.xlane.f32.xlu0 %v213_v28 }
 0x122   :  { %v212_v29 = vpop.xlane.xlu0 %211 }
 0x123   :  { %v220_v33 = vperm.slane %v212_v29, %v219_v31 }
 0x12a   :  { %v215_v32 = vpop.xlane.xlu0 %214 }
 0x12b   :  { %v221_v34 = vperm.slane %v215_v32, %v219_v31 }
 0x12d   :  { %v223_v35 = vsel %vm222_vm1, %v221_v34, %v220_v33 }
 0x12e   :  { %v226_v36 = vsel %vm225_vm2, %v223_v35, -inf }
 0x12f   :  { %227 = vmax.xlane.f32.xlu1 %v226_v36 }
 0x1a2   :  { %v228_v38 = vpop.xlane.xlu1 %227 }
 0x1a3   :  { %v230_v39 = vperm.slane %v228_v38, 0  ;;  %v231_v40 = vperm.slane %v228_v38, 1 }
 0x1a5   :  { %v234_v41 = vsub.f32 %v212_v29, %v230_v39  ;;  %v235_v42 = vsub.f32 %v215_v32, %v231_v40  ;;  %v491_v40 = vld [vmem:[%s818_s10] ss:$0 sm:$0xff] }
 0x1a7   :  { %v236_v43 = vmul.f32 1.442695, %v234_v41  ;;  %v238_v44 = vmul.f32 1.442695, %v235_v42 }
 0x1a9   :  { %497 = vpow2.f32 %v236_v43 }
 0x1aa   :  { %499 = vpow2.f32 %v238_v44 }
 0x1af   :  { %v498_v45 = vpop.eup %497 }
 0x1b0   :  { %v500_v46 = vpop.eup %499  ;;  %243 = vperm.xlu1 %484, %v498_v45  }
 0x1b1   :  { %246 = vperm.xlu2 %485, %v500_v46  }
 0x20b   :  { %v247_v47 = vpop.permute.xlu2 %246 }
 0x20c   :  { %v249_v49 = vperm.slane %v247_v47, %v219_v31 }
 0x222   :  { %v244_v48 = vpop.permute.xlu1 %243 }
 0x223   :  { %v248_v50 = vperm.slane %v244_v48, %v219_v31 }
 0x225   :  { %v250_v51 = vsel %vm222_vm1, %v249_v49, %v248_v50  ;;  %v489_v50 = vld [vmem:[%s816_s8] ss:$0 sm:$0xff]  ;;  %s672_s8 = smov 64  }
 0x226   :  { %v252_v52 = vsel %vm225_vm2, %v250_v51, 0.0 }
 0x227   :  { %253 = vadd.xlane.f32.xlu2 %v252_v52 }
 0x29a   :  { %v254_v53 = vpop.xlane.xlu2 %253 }
 0x29b   :  { %v256_v54 = vperm.slane %v254_v53, 0  ;;  %v257_v55 = vperm.slane %v254_v53, 1 }
 0x29d   :  { %501 = vrcp.f32 %v256_v54  ;;  %v271_v62 = vand.u32 2147483648, %v256_v54  ;;  %v286_v63 = vand.u32 2147483648, %v257_v55  ;;  %v269_v1 = vand.u32 2147483647, %v256_v54 }
 0x29e   :  { %503 = vrcp.f32 %v257_v55  ;;  %v284_v3 = vand.u32 2147483647, %v257_v55  ;;  %vm265_vm5 = vweird.f32 %v256_v54  ;;  %vm280_vm6 = vweird.f32 %v257_v55 }
 0x29f   :  { %v272_v6 = vor.u32 1.1754944e-38, %v271_v62  ;;  %v287_v7 = vor.u32 1.1754944e-38, %v286_v63  ;;  %vm270_vm9 = vcmp.eq.f32.partialorder %v269_v1, 8.507059e+37 }
 0x2a0   :  { %vm285_vm10 = vcmp.eq.f32.partialorder %v284_v3, 8.507059e+37 }
 0x2a3   :  { %v502_v56 = vpop.eup %501 }
 0x2a4   :  { %v504_v57 = vpop.eup %503  ;;  %v261_v58 = vmul.f32 %v502_v56, %v256_v54  ;;  %vm266_vm3 = vweird.f32 %v502_v56 }
 0x2a5   :  { %v276_v59 = vmul.f32 %v504_v57, %v257_v55  ;;  %vm281_vm4 = vweird.f32 %v504_v57  ;;  %vm267_vm7 = vmor %vm265_vm5, %vm266_vm3 }
 0x2a6   :  { %v262_v60 = vsub.f32 1.0, %v261_v58  ;;  %vm282_vm8 = vmor %vm280_vm6, %vm281_vm4 }
 0x2a7   :  { %v277_v61 = vsub.f32 1.0, %v276_v59 }
 0x2a8   :  { %v263_v0 = vmul.f32 %v502_v56, %v262_v60 }
 0x2a9   :  { %v278_v2 = vmul.f32 %v504_v57, %v277_v61 }
 0x2aa   :  { %v264_v4 = vadd.f32 %v502_v56, %v263_v0 }
 0x2ab   :  { %v279_v5 = vadd.f32 %v504_v57, %v278_v2 }
 0x2ac   :  { %v268_v8 = vsel %vm267_vm7, %v502_v56, %v264_v4  ;;  %v490_v4 = vld [vmem:[%s817_s9] ss:$0 sm:$0xff]  ;;  %s674_s9 = smov [#allocation12]  }
 0x2ad   :  { %v283_v10 = vsel %vm282_vm8, %v504_v57, %v279_v5  ;;  %v273_v11 = vsel %vm270_vm9, %v272_v6, %v268_v8  ;;  %s447_s23 = sshll.u32 %s674_s9, 4  ;;  %s448_s23 = int_to_ptr.vmem [resolvable:$true] %s447_s23 }
 0x2ae   :  { %v288_v12 = vsel %vm285_vm10, %v287_v7, %v283_v10  ;;  %v274_v13 = vmul.f32 %v498_v45, %v273_v11 }
 0x2af   :  { %v289_v14 = vmul.f32 %v500_v46, %v288_v12 }
 0x2b0   :  { %292 = vperm.xlu0 %486, %v274_v13  }
 0x2b1   :  { %297 = vperm.xlu1 %484, %v289_v14  }
 0x2b9   :  { %320 = vrot.lane.b32.xlu1 %v766_v9, %s671_s5 }
 0x322   :  { %v293_v25 = vpop.permute.xlu0 %292 }
 0x323   :  { %v298_v9 = vpop.permute.xlu1 %297  ;;  %v300_v26 = vmul.f32 %v293_v25, %v125_v23 }
 0x324   :  { %v301_v27 = vmul.f32 %v298_v9, %v126_v24 }
 0x325   :  { %v302_v28 = vsel %vm135_vm0, %v300_v26, 0.0 }
 0x326   :  { %v309_v29 = vsel %vm135_vm0, %v301_v27, 0.0  ;;  %v303_v30 = vrot.slane %v302_v28, 4 }
 0x327   :  { %v310_v31 = vrot.slane %v309_v29, 4 }
 0x328   :  { %v304_v32 = vadd.f32 %v303_v30, %v302_v28 }
 0x329   :  { %v311_v33 = vadd.f32 %v310_v31, %v309_v29 }
 0x32a   :  { %v305_v34 = vrot.slane %v304_v32, 2 }
 0x32b   :  { %v312_v35 = vrot.slane %v311_v33, 2  ;;  %v321_v43 = vpop.permute.xlu1 %320 }
 0x32c   :  { %v306_v36 = vadd.f32 %v305_v34, %v304_v32 }
 0x32d   :  { %v313_v37 = vadd.f32 %v312_v35, %v311_v33 }
 0x32e   :  { %v307_v38 = vrot.slane %v306_v36, 1 }
 0x32f   :  { %v314_v39 = vrot.slane %v313_v37, 1 }
 0x330   :  { %v308_v41 = vadd.f32 %v307_v38, %v306_v36 }
 0x331   :  { %v315_v42 = vadd.f32 %v314_v39, %v313_v37 }
 0x332   :  { %v417_v47 = vmul.f32 %v491_v40, %v308_v41 }
 0x333   :  { %v318_v44 = vsel %vm222_vm1, %v315_v42, %v308_v41  ;;  %v418_v45 = vmul.f32 %v491_v40, %v315_v42 }
 0x334   :  { %v323_v46 = vsel %vm135_vm0, %v318_v44, %v321_v43  ;;  %vm409_vm0 = vcmask 254976  }
 0x335   :  { %466 = vmatmul.msk.f32.vlgmr.msra.gmra.mxu2 %vm336_vm11, %v323_v46  ;;  %v421_v48 = vrot.slane %v418_v45, 7 }
 0x337   :  { %v422_v49 = vsel %vm222_vm1, %v421_v48, %v417_v47  ;;  %vm433_vm1 = vcmask 1024  }
 0x338   :  { %v424_v16 = vsel %vm409_vm0, %v422_v49, 0.0 }
 0x3b8   :  { %v357_v51 = vpop.f32.mrf.mxu2 }
 0x3b9   :  { %v358_v52 = vadd.f32 %v489_v50, %v357_v51 }
 0x3bb   :  { %380 = vrot.lane.b32.xlu1 %v358_v52, %s671_s5  ;;  %v467_v53 = vmul.f32 -1.442695, %v358_v52 }
 0x3bd   :  { %505 = vpow2.f32 %v467_v53 }
 0x3c3   :  { %v506_v54 = vpop.eup %505  ;;  %401 = vrot.lane.b32.xlu1 %v490_v4, %s671_s5 }
 0x3c4   :  { %v363_v55 = vadd.f32 1.0, %v506_v54 }
 0x3c6   :  { %507 = vrcp.f32 %v363_v55  ;;  %v375_v61 = vand.u32 2147483648, %v363_v55  ;;  %vm369_vm13 = vweird.f32 %v363_v55  ;;  %v373_v62 = vand.u32 2147483647, %v363_v55 }
 0x3c8   :  { %v376_v0 = vor.u32 1.1754944e-38, %v375_v61  ;;  %vm374_vm15 = vcmp.eq.f32.partialorder %v373_v62, 8.507059e+37 }
 0x3cc   :  { %v508_v56 = vpop.eup %507 }
 0x3cd   :  { %v365_v57 = vmul.f32 %v508_v56, %v363_v55  ;;  %vm370_vm12 = vweird.f32 %v508_v56 }
 0x3ce   :  { %vm371_vm14 = vmor %vm369_vm13, %vm370_vm12 }
 0x3cf   :  { %v366_v58 = vsub.f32 1.0, %v365_v57 }
 0x3d1   :  { %v367_v59 = vmul.f32 %v508_v56, %v366_v58 }
 0x3d3   :  { %v368_v60 = vadd.f32 %v508_v56, %v367_v59 }
 0x3d5   :  { %v372_v63 = vsel %vm371_vm14, %v508_v56, %v368_v60 }
 0x3d6   :  { %v377_v2 = vsel %vm374_vm15, %v376_v0, %v372_v63 }
 0x3d7   :  { %v390_v8 = vsub.f32 1.0, %v377_v2  ;;  %v396_v12 = vmul.f32 %v377_v2, %v321_v43 }
 0x42d   :  { %v381_v1 = vpop.permute.xlu1 %380 }
 0x42e   :  { %v383_v3 = vmul.f32 %v381_v1, %v377_v2 }
 0x430   :  { %385 = vrot.lane.b32.xlu2 %v383_v3, %s672_s8 }
 0x435   :  { %v402_v13 = vpop.permute.xlu1 %401 }
 0x48a   :  { %v386_v5 = vpop.permute.xlu2 %385 }
 0x48b   :  { %v388_v6 = vadd.f32 %v386_v5, %v358_v52 }
 0x48d   :  { %509 = vtanh.f32 %v388_v6 }
 0x493   :  { %v510_v7 = vpop.eup %509 }
 0x494   :  { %392 = vrot.lane.b32.xlu0 %v510_v7, %s673_s22 }
 0x506   :  { %v393_v10 = vpop.permute.xlu0 %392 }
 0x507   :  { %v395_v11 = vmul.f32 %v393_v10, %v390_v8 }
 0x509   :  { %v397_v14 = vadd.f32 %v396_v12, %v395_v11 }
 0x50b   :  { %v404_v15 = vmul.f32 %v402_v13, %v397_v14  ;;  %436 = vrot.lane.b32.xlu2 %v397_v14, %s673_s22 }
 0x50d   :  { %406 = vrot.lane.b32.xlu0 %v404_v15, %s673_s22 }
 0x537   :  { %425 = vadd.xlane.f32.xlu0 %v424_v16 }
 0x565   :  { %v437_v17 = vpop.permute.xlu2 %436 }
 0x566   :  { %439 = vst.msk [vmem:[#allocation12] sm:$0x3] %vm409_vm0, %v437_v17 }
 0x567   :  { %452 = dma.vmem_to_hbm [thread:$0]  %s448_s23, 32, %s450_s25, [#allocation5]  }
 0x57f   :  { %v407_v18 = vpop.permute.xlu0 %406 }
 0x580   :  { %v410_v19 = vsel %vm409_vm0, %v407_v18, 0.0 }
 0x581   :  { %411 = vadd.xlane.f32.xlu1 %v410_v19 }
 0x5aa   :  { %v426_v21 = vpop.xlane.xlu0 %425 }
 0x5f4   :  { %v412_v22 = vpop.xlane.xlu1 %411 }
 0x5f5   :  { %v427_v23 = vadd.f32 %v426_v21, %v412_v22 }
 0x5f7   :  { %v432_v24 = vadd.f32 %v492_v20, %v427_v23 }
 0x5f9   :  { %434 = vst.msk [vmem:[%s820_s12] sm:$0x3] %vm433_vm1, %v432_v24 }
 0x5fa   :  { %661 = dma.done.wait [#allocation5], 32  }
 0x5fb   :  { %662 = vsyncadd [#allocation5], 4294967264 }
 0x5fc   :  { %459 = vsyncpa [#allocation4], 1 }
 0x5fd   :  { %460 = vsyncpa [#allocation7], 1 }
 0x5fe   :  { %461 = vsyncpa [#allocation10], 1 }
 0x5ff   :  { %462 = vsyncpa [#allocation5], 1 }

</bundles_post_ra>
